<compile_context>
chip_gen: v6e
topology: v6e:2x2x1
jax: 0.10.0
libtpu: 0.0.40
codegen_flags: <defaults>
</compile_context>

<pallas_src>
import jax
import jax.numpy as jnp
from jax.experimental import pallas as pl
from jax.experimental.pallas import tpu as pltpu

N_INPUT = 91
H1 = 64
H2 = 32
H3 = 1

# 3 batch-tiled streams (x, x1, x2), each lane-padded to 128 and double-buffered.
_BYTES_PER_ROW_VMEM = 3 * 2 * 128 * 4          # = 3 KiB per batch row
_VMEM_CAP = 48 << 20                           # headroom under v7x 64 MiB physical
_TB_HARD_CAP = 14336                           # keeps _BYTES_PER_ROW_VMEM*TB < cap


def _discriminator_kernel(x_ref, w1_ref, b1_ref, w2_ref, b2_ref, w3_ref, b3_ref,
                          x1_ref, x2_ref):
    x = x_ref[...]                                                    # (TB, 91)

    # fc1 + ReLU (MXU; Mosaic masks the K=91 contraction padding).
    h1 = jnp.dot(x, w1_ref[...], preferred_element_type=jnp.float32)
    h1 = jnp.maximum(h1 + b1_ref[...], 0.0)                           # (TB, 64)

    # fc2 + ReLU -> x1 (MXU)
    h2 = jnp.dot(h1, w2_ref[...], preferred_element_type=jnp.float32)
    h2 = jnp.maximum(h2 + b2_ref[...], 0.0)                           # (TB, 32)
    x1_ref[...] = h2.astype(x1_ref.dtype)

    # fc3 + sigmoid -> x2.  An N=1 matmul wastes an MXU round trip for 32 MACs;
    # use a VPU multiply + lane reduction instead (runs in otherwise-idle slots).
    logits = jnp.sum(h2 * w3_ref[...], axis=-1, keepdims=True) + b3_ref[...]
    x2_ref[...] = (1.0 / (1.0 + jnp.exp(-logits))).astype(x2_ref.dtype)


def _round_up(v, m):
    return ((v + m - 1) // m) * m


def discriminator_forward(x, params, *, tb_max=8192):
    """x: (B, 91) float32.  params: w1 (91,64), b1 (1,64), w2 (64,32), b2 (1,32),
    w3 (1,32) (PyTorch (out,in) row for fc3), b3 (1,1)."""
    B = x.shape[0]
    w1, b1 = params["w1"], params["b1"]
    w2, b2 = params["w2"], params["b2"]
    w3, b3 = params["w3"], params["b3"]

    x = x.astype(jnp.float32)
    tb_max = max(8, min(tb_max, _TB_HARD_CAP))

    # Balanced batch tiling: avoids padding nearly a whole tile for unlucky B.
    num_tiles = pl.cdiv(B, tb_max)
    # v7x megacore: make sure a large batch gets at least 2 grid steps so the
    # "parallel" axis can be sharded across both TensorCores.
    if num_tiles == 1 and B >= 2048:
        num_tiles = 2
    TB = _round_up(pl.cdiv(B, num_tiles), 8)
    Bp = num_tiles * TB
    if Bp != B:
        x = jnp.pad(x, ((0, Bp - B), (0, 0)))     # zero rows; sliced off below
    grid = (num_tiles,)

    # Explicit VMEM budget (narrow blocks lane-pad to 128 in VMEM).
    weight_vmem = 2 * 4 * (N_INPUT * H1 + H1 + H1 * H2 + 2 * H2 + 1)
    vmem_need = TB * _BYTES_PER_ROW_VMEM + weight_vmem
    vmem_limit = int(min(max(vmem_need + (4 << 20), 32 << 20), _VMEM_CAP))

    flops = 2 * Bp * (N_INPUT * H1 + H1 * H2 + H2)
    weight_bytes = 4 * (N_INPUT * H1 + H1 + H1 * H2 + H2 + H2 + 1)
    bytes_accessed = 4 * Bp * (N_INPUT + H2 + H3) + weight_bytes

    x1, x2 = pl.pallas_call(
        _discriminator_kernel,
        out_shape=(
            jax.ShapeDtypeStruct((Bp, H2), jnp.float32),
            jax.ShapeDtypeStruct((Bp, H3), jnp.float32),
        ),
        grid=grid,
        in_specs=[
            pl.BlockSpec((TB, N_INPUT), lambda i: (i, 0)),   # x: tiled over batch
            pl.BlockSpec((N_INPUT, H1), lambda i: (0, 0)),   # weights / biases stay
            pl.BlockSpec((1, H1),       lambda i: (0, 0)),   # VMEM-resident across
            pl.BlockSpec((H1, H2),      lambda i: (0, 0)),   # all grid steps
            pl.BlockSpec((1, H2),       lambda i: (0, 0)),
            pl.BlockSpec((1, H2),       lambda i: (0, 0)),
            pl.BlockSpec((1, 1),        lambda i: (0, 0)),
        ],
        out_specs=(
            pl.BlockSpec((TB, H2), lambda i: (i, 0)),
            pl.BlockSpec((TB, H3), lambda i: (i, 0)),
        ),
        compiler_params=pltpu.CompilerParams(
            dimension_semantics=("parallel",),
            vmem_limit_bytes=vmem_limit),
        cost_estimate=pl.CostEstimate(
            flops=flops, bytes_accessed=bytes_accessed, transcendentals=Bp),
    )(x, w1, b1, w2, b2, w3, b3)

    if Bp != B:
        x1 = x1[:B]
        x2 = x2[:B]
    return x1, x2


def init_params(key):
    """Deterministic init matching nn.Linear fan-in bounds.
    w1/w2 stored (in, out); w3 stored as a (1, 32) row; biases 2-D (1, out)."""
    ks = jax.random.split(key, 6)

    def linear(kw, kb, fan_in, fan_out, w_shape):
        bound = 1.0 / jnp.sqrt(fan_in)
        w = jax.random.uniform(kw, w_shape, jnp.float32, -bound, bound)
        b = jax.random.uniform(kb, (1, fan_out), jnp.float32, -bound, bound)
        return w, b

    w1, b1 = linear(ks[0], ks[1], N_INPUT, H1, (N_INPUT, H1))
    w2, b2 = linear(ks[2], ks[3], H1, H2, (H1, H2))
    w3, b3 = linear(ks[4], ks[5], H2, H3, (H3, H2))   # (1, 32) row, (1, 1) bias
    return {"w1": w1, "b1": b1, "w2": w2, "b2": b2, "w3": w3, "b3": b3}


def _reference_forward(x, p):
    h1 = jnp.maximum(x @ p["w1"] + p["b1"], 0.0)
    h2 = jnp.maximum(h1 @ p["w2"] + p["b2"], 0.0)
    x2 = jax.nn.sigmoid(h2 @ p["w3"].T + p["b3"])
    return h2, x2


if __name__ == "__main__":
    key = jax.random.PRNGKey(0)
    k_x, k_p, k_x2 = jax.random.split(key, 3)
    params = init_params(k_p)

    # Small shape consistent with the module (batch=8 rows of 91 features).
    B = 8
    x = jax.random.normal(k_x, (B, N_INPUT), jnp.float32)
    x1, x2 = discriminator_forward(x, params)
    jax.block_until_ready((x1, x2))

    r1, r2 = _reference_forward(x, params)
    assert x1.shape == (B, H2) and x2.shape == (B, H3)
    assert jnp.allclose(x1, r1, atol=1e-5, rtol=1e-5)
    assert jnp.allclose(x2, r2, atol=1e-5, rtol=1e-5)

    # Second check: batch not a multiple of 8 (exercises row-padding + slice).
    B2 = 13
    xb = jax.random.normal(k_x2, (B2, N_INPUT), jnp.float32)
    y1, y2 = discriminator_forward(xb, params)
    jax.block_until_ready((y1, y2))
    s1, s2 = _reference_forward(xb, params)
    assert y1.shape == (B2, H2) and y2.shape == (B2, H3)
    assert jnp.allclose(y1, s1, atol=1e-5, rtol=1e-5)
    assert jnp.allclose(y2, s2, atol=1e-5, rtol=1e-5)

    print("KERNEL_OK")
</pallas_src>

<mosaic_0001>
module attributes {stable_mosaic.version = 11 : i64} {
  func.func @_discriminator_kernel(%arg0: i32, %arg1: memref<8x91xf32, #tpu.memory_space<vmem>>, %arg2: memref<91x64xf32, #tpu.memory_space<vmem>>, %arg3: memref<1x64xf32, #tpu.memory_space<vmem>>, %arg4: memref<64x32xf32, #tpu.memory_space<vmem>>, %arg5: memref<1x32xf32, #tpu.memory_space<vmem>>, %arg6: memref<1x32xf32, #tpu.memory_space<vmem>>, %arg7: memref<1x1xf32, #tpu.memory_space<vmem>>, %arg8: memref<8x32xf32, #tpu.memory_space<vmem>>, %arg9: memref<8x1xf32, #tpu.memory_space<vmem>>) attributes {dimension_semantics = [#tpu.dimension_semantics<parallel>], iteration_bounds = array<i64: 1>, scalar_prefetch = 0 : i64, scratch_operands = 0 : i64, tpu.core_type = #tpu.core_type<tc>, window_params = [{transform_indices = @transform_0, window_bounds = array<i64: 8, 91>}, {pipeline_mode = #tpu.pipeline_mode<synchronous>, transform_indices = @transform_1, window_bounds = array<i64: 91, 64>}, {pipeline_mode = #tpu.pipeline_mode<synchronous>, transform_indices = @transform_2, window_bounds = array<i64: 1, 64>}, {pipeline_mode = #tpu.pipeline_mode<synchronous>, transform_indices = @transform_3, window_bounds = array<i64: 64, 32>}, {pipeline_mode = #tpu.pipeline_mode<synchronous>, transform_indices = @transform_4, window_bounds = array<i64: 1, 32>}, {pipeline_mode = #tpu.pipeline_mode<synchronous>, transform_indices = @transform_5, window_bounds = array<i64: 1, 32>}, {pipeline_mode = #tpu.pipeline_mode<synchronous>, transform_indices = @transform_6, window_bounds = array<i64: 1, 1>}, {transform_indices = @transform_7, window_bounds = array<i64: 8, 32>}, {transform_indices = @transform_8, window_bounds = array<i64: 8, 1>}]} {
    %c0 = arith.constant 0 : index
    %c0_0 = arith.constant 0 : index
    %0 = vector.load %arg1[%c0, %c0_0] : memref<8x91xf32, #tpu.memory_space<vmem>>, vector<8x91xf32>
    %c0_1 = arith.constant 0 : index
    %c0_2 = arith.constant 0 : index
    %1 = vector.load %arg2[%c0_1, %c0_2] : memref<91x64xf32, #tpu.memory_space<vmem>>, vector<91x64xf32>
    %cst = arith.constant dense<0.000000e+00> : vector<8x64xf32>
    %2 = tpu.matmul %0, %1, %cst {dimension_numbers = #tpu.dot_dimension_numbers<[1], [0], [0], [1], [0, 0, 1, 1], [], []>} : vector<8x91xf32>, vector<91x64xf32>, vector<8x64xf32> -> vector<8x64xf32>
    %c0_3 = arith.constant 0 : index
    %c0_4 = arith.constant 0 : index
    %3 = vector.load %arg3[%c0_3, %c0_4] : memref<1x64xf32, #tpu.memory_space<vmem>>, vector<1x64xf32>
    %4 = vector.broadcast %3 : vector<1x64xf32> to vector<8x64xf32>
    %5 = arith.addf %2, %4 : vector<8x64xf32>
    %cst_5 = arith.constant 0.000000e+00 : f32
    %6 = vector.broadcast %cst_5 : f32 to vector<8x64xf32>
    %7 = arith.maximumf %5, %6 : vector<8x64xf32>
    %c0_6 = arith.constant 0 : index
    %c0_7 = arith.constant 0 : index
    %8 = vector.load %arg4[%c0_6, %c0_7] : memref<64x32xf32, #tpu.memory_space<vmem>>, vector<64x32xf32>
    %cst_8 = arith.constant dense<0.000000e+00> : vector<8x32xf32>
    %9 = tpu.matmul %7, %8, %cst_8 {dimension_numbers = #tpu.dot_dimension_numbers<[1], [0], [0], [1], [0, 0, 1, 1], [], []>} : vector<8x64xf32>, vector<64x32xf32>, vector<8x32xf32> -> vector<8x32xf32>
    %c0_9 = arith.constant 0 : index
    %c0_10 = arith.constant 0 : index
    %10 = vector.load %arg5[%c0_9, %c0_10] : memref<1x32xf32, #tpu.memory_space<vmem>>, vector<1x32xf32>
    %11 = vector.broadcast %10 : vector<1x32xf32> to vector<8x32xf32>
    %12 = arith.addf %9, %11 : vector<8x32xf32>
    %cst_11 = arith.constant 0.000000e+00 : f32
    %13 = vector.broadcast %cst_11 : f32 to vector<8x32xf32>
    %14 = arith.maximumf %12, %13 : vector<8x32xf32>
    %c0_12 = arith.constant 0 : index
    %c0_13 = arith.constant 0 : index
    %15 = vector.load %arg8[%c0_12, %c0_13] : memref<8x32xf32, #tpu.memory_space<vmem>>, vector<8x32xf32>
    tpu.vector_store %arg8[%c0_12, %c0_13], %14 {strides = array<i32>} : memref<8x32xf32, #tpu.memory_space<vmem>>, vector<8x32xf32>,
    %c0_14 = arith.constant 0 : index
    %c0_15 = arith.constant 0 : index
    %16 = vector.load %arg6[%c0_14, %c0_15] : memref<1x32xf32, #tpu.memory_space<vmem>>, vector<1x32xf32>
    %17 = vector.broadcast %16 : vector<1x32xf32> to vector<8x32xf32>
    %18 = arith.mulf %14, %17 : vector<8x32xf32>
    %cst_16 = arith.constant dense<0.000000e+00> : vector<8xf32>
    %19 = vector.multi_reduction <add>, %18, %cst_16 [1] : vector<8x32xf32> to vector<8xf32>
    %20 = vector.shape_cast %19 : vector<8xf32> to vector<8x1xf32>
    %c0_17 = arith.constant 0 : index
    %c0_18 = arith.constant 0 : index
    %21 = vector.load %arg7[%c0_17, %c0_18] : memref<1x1xf32, #tpu.memory_space<vmem>>, vector<1x1xf32>
    %22 = vector.broadcast %21 : vector<1x1xf32> to vector<8x1xf32>
    %23 = arith.addf %20, %22 : vector<8x1xf32>
    %cst_19 = arith.constant 0.000000e+00 : f32
    %24 = vector.broadcast %cst_19 : f32 to vector<8x1xf32>
    %25 = arith.subf %24, %23 : vector<8x1xf32>
    %26 = math.exp %25 : vector<8x1xf32>
    %cst_20 = arith.constant 1.000000e+00 : f32
    %27 = vector.broadcast %cst_20 : f32 to vector<8x1xf32>
    %28 = arith.addf %27, %26 : vector<8x1xf32>
    %cst_21 = arith.constant 1.000000e+00 : f32
    %29 = vector.broadcast %cst_21 : f32 to vector<8x1xf32>
    %30 = arith.divf %29, %28 : vector<8x1xf32>
    %c0_22 = arith.constant 0 : index
    %c0_23 = arith.constant 0 : index
    %31 = vector.load %arg9[%c0_22, %c0_23] : memref<8x1xf32, #tpu.memory_space<vmem>>, vector<8x1xf32>
    tpu.vector_store %arg9[%c0_22, %c0_23], %30 {strides = array<i32>} : memref<8x1xf32, #tpu.memory_space<vmem>>, vector<8x1xf32>,
    return
  }
  func.func @transform_0(%arg0: i32) -> (i32, i32) {
    %c0_i32 = arith.constant 0 : i32
    %c0_i32_0 = arith.constant 0 : i32
    return %arg0, %c0_i32 : i32, i32
  }
  func.func @transform_1(%arg0: i32) -> (i32, i32) {
    %c0_i32 = arith.constant 0 : i32
    %c0_i32_0 = arith.constant 0 : i32
    %c0_i32_1 = arith.constant 0 : i32
    return %c0_i32, %c0_i32_0 : i32, i32
  }
  func.func @transform_2(%arg0: i32) -> (i32, i32) {
    %c0_i32 = arith.constant 0 : i32
    %c0_i32_0 = arith.constant 0 : i32
    %c0_i32_1 = arith.constant 0 : i32
    return %c0_i32, %c0_i32_0 : i32, i32
  }
  func.func @transform_3(%arg0: i32) -> (i32, i32) {
    %c0_i32 = arith.constant 0 : i32
    %c0_i32_0 = arith.constant 0 : i32
    %c0_i32_1 = arith.constant 0 : i32
    return %c0_i32, %c0_i32_0 : i32, i32
  }
  func.func @transform_4(%arg0: i32) -> (i32, i32) {
    %c0_i32 = arith.constant 0 : i32
    %c0_i32_0 = arith.constant 0 : i32
    %c0_i32_1 = arith.constant 0 : i32
    return %c0_i32, %c0_i32_0 : i32, i32
  }
  func.func @transform_5(%arg0: i32) -> (i32, i32) {
    %c0_i32 = arith.constant 0 : i32
    %c0_i32_0 = arith.constant 0 : i32
    %c0_i32_1 = arith.constant 0 : i32
    return %c0_i32, %c0_i32_0 : i32, i32
  }
  func.func @transform_6(%arg0: i32) -> (i32, i32) {
    %c0_i32 = arith.constant 0 : i32
    %c0_i32_0 = arith.constant 0 : i32
    %c0_i32_1 = arith.constant 0 : i32
    return %c0_i32, %c0_i32_0 : i32, i32
  }
  func.func @transform_7(%arg0: i32) -> (i32, i32) {
    %c0_i32 = arith.constant 0 : i32
    %c0_i32_0 = arith.constant 0 : i32
    return %arg0, %c0_i32 : i32, i32
  }
  func.func @transform_8(%arg0: i32) -> (i32, i32) {
    %c0_i32 = arith.constant 0 : i32
    %c0_i32_0 = arith.constant 0 : i32
    return %arg0, %c0_i32 : i32, i32
  }
}

</mosaic_0001>

<bundles_post_ra>
// kernel: tpu_custom_call.1
= control target key start
LH: loop header
LB: loop body
LE: loop exit
PB: predicated region body
PF: predicated region fallthrough
CT: control target
= control target key end

     0   :  { %s522_s0 = inlined_call_operand.vmem [shape: f32[8,91], index: 0, kind: input, shape index: {}]   ;;  %s523_s1 = inlined_call_operand.vmem [shape: f32[91,64], index: 1, kind: input, shape index: {}]   ;;  %s524_s2 = inlined_call_operand.vmem [shape: f32[1,64], index: 2, kind: input, shape index: {}]   ;;  %s525_s3 = inlined_call_operand.vmem [shape: f32[64,32], index: 3, kind: input, shape index: {}]   ;;  %s526_s4 = inlined_call_operand.vmem [shape: f32[1,32], index: 4, kind: input, shape index: {}]   ;;  %s527_s5 = inlined_call_operand.vmem [shape: f32[1,32], index: 5, kind: input, shape index: {}]   ;;  %s528_s6 = inlined_call_operand.<no memory space> [shape: f32[1,1], index: 6, kind: input, shape index: {}]   ;;  %s529_s7 = inlined_call_operand.hbm [shape: f32[8,32], index: 7, kind: output, shape index: {0}]   ;;  %s530_s8 = inlined_call_operand.vmem [shape: f32[8,1], index: 8, kind: output, shape index: {1}]  }
   0x1   :  { %v14_v0 = vstv %s528_s6 }
   0x2   :  { %15 = vst [vmem:[#allocation2] sm:$0x1] %v14_v0 }
   0x3   :  { %v43_v1 = vld [vmem:[%s523_s1 + $0x58] sm:$0x7]  ;;  %vm55_vm0 = vcmask 1042432   ;;  %v371_v2 = vmov 0.0   ;;  %v42_v3 = vld [vmem:[%s523_s1 + $0x50] sm:$0xff]  ;;  %vm372_vm1 = vmmov 0  }
   0x4   :  { %296 = vmatprep.subr.mxu0 %v371_v2  ;;  %323 = vmatprep.subr.mxu1 %v371_v2  ;;  %v41_v4 = vld [vmem:[%s523_s1 + $0x48] sm:$0xff]  ;;  %v137_v5 = vld [vmem:[%s525_s3 + $0x38] sm:$0xff]  ;;  %v136_v6 = vld [vmem:[%s525_s3 + $0x30] sm:$0xff] }
   0x5   :  { %297 = vmatpush3.msk.msra.mxu0 %vm55_vm0, %v43_v1  ;;  %320 = vmatprep.mubr.msk.f32.mxu0 %vm372_vm1, %v371_v2  ;;  %v40_v7 = vld [vmem:[%s523_s1 + $0x40] sm:$0xff]  ;;  %v135_v8 = vld [vmem:[%s525_s3 + $0x28] sm:$0xff] }
   0x6   :  { %298 = vmatprep.subr.mxu0 %v371_v2  ;;  %339 = vmatprep.mubr.msk.f32.mxu1 %vm372_vm1, %v371_v2 }
   0x7   :  { %299 = vmatpush3.msra.mxu0 %v42_v3  ;;  %324 = vmatpush3.msra.mxu1 %v137_v5 }
   0x8   :  { %300 = vmatprep.subr.mxu0 %v371_v2  ;;  %325 = vmatprep.subr.mxu1 %v371_v2 }
   0x9   :  { %301 = vmatpush3.msra.mxu0 %v41_v4 }
   0xa   :  { %16 = vsyncpa [#allocation4], 0  ;;  %302 = vmatprep.subr.mxu0 %v371_v2  ;;  %v39_v9 = vld [vmem:[%s523_s1 + $0x38] sm:$0xff]  ;;  %326 = vmatpush3.msra.mxu1 %v136_v6  ;;  %v134_v10 = vld [vmem:[%s525_s3 + $0x20] sm:$0xff]  ;;  %vm51_vm2 = vcmask 744448   ;;  %vm145_vm3 = vcmask 523264  }
   0xb   :  { %303 = vmatpush3.msra.mxu0 %v40_v7  ;;  %327 = vmatprep.subr.mxu1 %v371_v2  ;;  %v38_v11 = vld [vmem:[%s523_s1 + $0x30] sm:$0xff]  ;;  %v133_v12 = vld [vmem:[%s525_s3 + $0x18] sm:$0xff]  ;;  %v37_v13 = vld [vmem:[%s523_s1 + $0x28] sm:$0xff]  ;;  %vm220_vm4 = vcmask 261120  }
   0xc   :  { %304 = vmatprep.subr.mxu0 %v371_v2  ;;  %328 = vmatpush3.msra.mxu1 %v135_v8  ;;  %v36_v14 = vld [vmem:[%s523_s1 + $0x20] sm:$0xff]  ;;  %v35_v15 = vld [vmem:[%s523_s1 + $0x18] sm:$0xff]  ;;  %v34_v16 = vld [vmem:[%s523_s1 + $0x10] sm:$0xff] }
   0xd   :  { %305 = vmatpush3.msra.mxu0 %v39_v9  ;;  %329 = vmatprep.subr.mxu1 %v371_v2  ;;  %v33_v17 = vld [vmem:[%s523_s1 + $0x8] sm:$0xff]  ;;  %v32_v18 = vld [vmem:[%s523_s1] sm:$0xff]  ;;  %v132_v20 = vld [vmem:[%s525_s3 + $0x10] sm:$0xff] }
   0xe   :  { %306 = vmatprep.subr.mxu0 %v371_v2  ;;  %330 = vmatpush3.msra.mxu1 %v134_v10  ;;  %v31_v19 = vld [vmem:[%s522_s0] sm:$0xff]  ;;  %v131_v21 = vld [vmem:[%s525_s3 + $0x8] sm:$0xff] }
   0xf   :  { %307 = vmatpush3.msra.mxu0 %v38_v11  ;;  %331 = vmatprep.subr.mxu1 %v371_v2  ;;  %v130_v22 = vld [vmem:[%s525_s3] sm:$0xff] }
  0x10   :  { %308 = vmatprep.subr.mxu0 %v371_v2  ;;  %332 = vmatpush3.msra.mxu1 %v133_v12  ;;  %v267_v23 = vld [vmem:[%s524_s2] ss:$0 sm:$0xff]  ;;  %s373_s2 = smov [#allocation3]  }
  0x11   :  { %309 = vmatpush3.msra.mxu0 %v37_v13  ;;  %333 = vmatprep.subr.mxu1 %v371_v2  ;;  %v270_v28 = vld [vmem:[%s526_s4] ss:$0 sm:$0xff]  ;;  %s255_s28 = sshll.u32 %s373_s2, 4  ;;  %s256_s28 = int_to_ptr.vmem [resolvable:$true] %s255_s28 }
  0x12   :  { %310 = vmatprep.subr.mxu0 %v371_v2  ;;  %334 = vmatpush3.msra.mxu1 %v132_v20  ;;  %v272_v32 = vld [vmem:[%s527_s5] ss:$0 sm:$0xff]  ;;  %s349_s29 = scalar_lea.vmem %s256_s28, 128  ;;  %p354_p1 = scmp.lt.s32.totalorder %s256_s28, %s256_s28 }
  0x13   :  { %311 = vmatpush3.msra.mxu0 %v36_v14  ;;  %335 = vmatprep.subr.mxu1 %v371_v2  ;;  %p350_p0 = scmp.ne.s32.totalorder %s256_s28, %s349_s29  ;;  %p355_p2 = scmp.lt.s32.totalorder %s349_s29, %s349_s29 }
  0x14   :  { %312 = vmatprep.subr.mxu0 %v371_v2  ;;  %336 = vmatpush3.msra.mxu1 %v131_v21 }
  0x15   :  { %313 = vmatpush3.msra.mxu0 %v35_v15  ;;  %337 = vmatprep.subr.mxu1 %v371_v2  ;;  %p356_p3 = por %p355_p2, %p354_p1 }
  0x16   :  { %314 = vmatprep.subr.mxu0 %v371_v2  ;;  %338 = vmatpush3.msra.mxu1 %v130_v22 }
  0x17   :  { %315 = vmatpush3.msra.mxu0 %v34_v16  ;;  %p357_p4 = pnand %p356_p3, %p350_p0 }
  0x18   :  { %316 = vmatprep.subr.mxu0 %v371_v2 }
  0x19   :  { %317 = vmatpush3.msra.mxu0 %v33_v17 }
  0x1a   :  { %318 = vmatprep.subr.mxu0 %v371_v2 }
  0x1b   :  { %319 = vmatpush3.msra.mxu0 %v32_v18 }
  0x1c   :  { %321 = vmatmul.mubr.msk.f32.vlgmr.msra.gmra.mxu0 %vm51_vm2, %v31_v19 }
  0xdc   :  { %v125_v24 = vpop.f32.mrf.mxu0 }
  0xdd   :  { %v126_v25 = vadd.f32 %v267_v23, %v125_v24 }
  0xde   :  { %v322_v26 = vpop.f32.mrf.mxu0 }
  0xdf   :  { %v129_v27 = vmax.f32 %v126_v25, 0.0 }
  0xe1   :  { %340 = vmatmul.mubr.msk.f32.vlgmr.msra.gmra.mxu1 %vm145_vm3, %v129_v27 }
 0x1a1   :  { %v215_v29 = vpop.f32.mrf.mxu1 }
 0x1a2   :  { %v216_v30 = vadd.f32 %v270_v28, %v215_v29 }
 0x1a3   :  { %v341_v31 = vpop.f32.mrf.mxu1 }
 0x1a4   :  { %v219_v33 = vmax.f32 %v216_v30, 0.0 }
 0x1a6   :  { %v229_v34 = vmul.f32 %v272_v32, %v219_v33  ;;  %221 = vst.msk [vmem:[#allocation3] sm:$0xff] %vm220_vm4, %v219_v33 }
 0x1a8   :  { %v230_v35 = vsel %vm220_vm4, %v229_v34, 0.0 }
 0x1a9   :  { %231 = vadd.xlane.f32.xlu0 %v230_v35 }
 0x1aa   :  { %360 = shalt.err (!%p357_p4)
}
 0x1ab   :  { %258 = dma.vmem_to_hbm [thread:$0]  %s256_s28, 128, %s529_s7, [#allocation4]   ;;  %v273_v36 = vld [vmem:[#allocation2] ss:$0 sm:$0xff]  ;;  %vm247_vm5 = vcmask 7168  }
 0x232   :  { %v232_v37 = vpop.xlane.xlu0 %231 }
 0x233   :  { %v240_v38 = vadd.f32 %v273_v36, %v232_v37 }
 0x235   :  { %v241_v39 = vsub.f32 0.0, %v240_v38 }
 0x237   :  { %v242_v40 = vmul.f32 1.442695, %v241_v39 }
 0x239   :  { %345 = vpow2.f32 %v242_v40 }
 0x246   :  { %v346_v41 = vpop.eup %345 }
 0x247   :  { %v244_v42 = vadd.f32 1.0, %v346_v41 }
 0x249   :  { %347 = vrcp.f32 %v244_v42 }
 0x256   :  { %v348_v43 = vpop.eup %347 }
 0x257   :  { %248 = vst.msk [vmem:[%s530_s8] sm:$0xff] %vm247_vm5, %v348_v43 }
 0x258   :  { %369 = dma.done.wait [#allocation4], 128  }
 0x259   :  { %370 = vsyncadd [#allocation4], 4294967168 }
 0x25a   :  { %266 = vsyncpa [#allocation4], 1 }

</bundles_post_ra>
